<compile_context>
chip_gen: v7x
topology: tpu7x:2x2x1
jax: 0.10.0
libtpu: 0.0.40
codegen_flags: <defaults>
</compile_context>

<pallas_src>
import jax
import jax.numpy as jnp
from jax.experimental import pallas as pl
from jax.experimental.pallas import tpu as pltpu

# Layer sizes of the Sequential.
LAYER_DIMS = [21, 42, 63, 126, 63, 21, 7, 1]
IN_DIM = LAYER_DIMS[0]
DEFAULT_TILE_B = 4096  # rows per grid step; clamped/split for small batches


def _round_up(v: int, m: int) -> int:
    return ((v + m - 1) // m) * m


def _mlp_kernel(x_ref,
                w1, b1, w2, b2, w3, b3, w4, b4, w5, b5, w6, b6, w7t, b7,
                o_ref):
    """Fused MLP forward for one (TILE_B, 21) tile of rows."""
    h = x_ref[...]  # (TILE_B, 21) float32

    def dense_relu(h, w_ref, b_ref):
        # bf16 operands -> single MXU pass; f32 accumulate + f32 elementwise.
        z = jnp.dot(h.astype(jnp.bfloat16), w_ref[...],
                    preferred_element_type=jnp.float32) + b_ref[...]
        return jnp.maximum(z, 0.0)

    h = dense_relu(h, w1, b1)   # 21 -> 42
    h = dense_relu(h, w2, b2)   # 42 -> 63   (Dropout(p=0.0) == identity)
    h = dense_relu(h, w3, b3)   # 63 -> 126
    h = dense_relu(h, w4, b4)   # 126 -> 63
    h = dense_relu(h, w5, b5)   # 63 -> 21
    h = dense_relu(h, w6, b6)   # 21 -> 7

    # Final 7 -> 1 layer computed transposed so the output is lane-dense:
    #   z^T[0, b] = sum_k W7t[0, k] * h[b, k]   ->  shape (1, TILE_B)
    zt = jax.lax.dot_general(
        w7t[...], h.astype(jnp.bfloat16),
        dimension_numbers=(((1,), (1,)), ((), ())),
        preferred_element_type=jnp.float32) + b7[...]
    o_ref[...] = jax.nn.sigmoid(zt)[None]       # (1, 1, TILE_B) lane-dense store


def simple_classifier_forward(x, params, *, tile_b=DEFAULT_TILE_B):
    """x: (B, 21); params: list of (W_(in,out) f32, b_(1,out) f32). Returns (B,) f32."""
    batch = x.shape[0]
    x = x.astype(jnp.float32)

    # Robust tile size: round the caller value up to a lane multiple (128)
    # rather than asserting, then clamp to the (padded) batch.
    tile_b = _round_up(max(int(tile_b), 128), 128)
    rounded_b = _round_up(max(batch, 1), 128)
    if rounded_b > 128:
        # Never collapse to grid=(1,) when more than one 128-row chunk exists:
        # >= 2 "parallel" steps lets v7x shard across its 2 TensorCores and
        # gives the input DMA something to overlap (no-op on v5e/v6e).
        tile_b = min(tile_b, _round_up(pl.cdiv(rounded_b, 2), 128))
    tile_b = min(tile_b, rounded_b)
    padded_b = _round_up(rounded_b, tile_b)
    num_tiles = padded_b // tile_b
    if padded_b != batch:
        x = jnp.pad(x, ((0, padded_b - batch), (0, 0)))

    # Flatten params.  Weights are cast to bf16 (single-pass MXU operands);
    # biases stay f32.  The last layer's weight is passed PyTorch-native
    # (out, in) = (1, 7) to enable the transposed (lane-dense) final matmul.
    flat_params = []
    for i, (w, b) in enumerate(params):
        w = w.astype(jnp.bfloat16)
        b = b.astype(jnp.float32)
        if i == len(params) - 1:
            flat_params += [w.T, b]          # (1, 7), (1, 1)
        else:
            flat_params += [w, b]

    in_specs = [pl.BlockSpec((tile_b, IN_DIM), lambda i: (i, 0))]
    for p in flat_params:
        # Full-array block, constant index_map -> VMEM-resident across steps.
        in_specs.append(pl.BlockSpec(p.shape, lambda i: (0, 0)))

    # Advisory cost estimate so XLA schedules/overlaps the custom call sanely.
    flops = 2 * padded_b * sum(LAYER_DIMS[i] * LAYER_DIMS[i + 1]
                               for i in range(len(LAYER_DIMS) - 1))
    param_bytes = sum(LAYER_DIMS[i] * LAYER_DIMS[i + 1] * 2 + LAYER_DIMS[i + 1] * 4
                      for i in range(len(LAYER_DIMS) - 1))
    cost = pl.CostEstimate(
        flops=flops,
        transcendentals=padded_b,                                  # sigmoid exp per row
        bytes_accessed=padded_b * IN_DIM * 4 + padded_b * 4 + param_bytes,
    )

    out = pl.pallas_call(
        _mlp_kernel,
        grid=(num_tiles,),
        out_shape=jax.ShapeDtypeStruct((num_tiles, 1, tile_b), jnp.float32),
        in_specs=in_specs,
        out_specs=pl.BlockSpec((1, 1, tile_b), lambda i: (i, 0, 0)),
        compiler_params=pltpu.CompilerParams(
            dimension_semantics=("parallel",),
            vmem_limit_bytes=48 * 1024 * 1024,
        ),
        cost_estimate=cost,
    )(x, *flat_params)

    # torch.sigmoid(...).squeeze(): one scalar per row.
    return out.reshape(padded_b)[:batch]


def init_params(key):
    """Deterministic init mimicking PyTorch nn.Linear default (uniform +-1/sqrt(fan_in))."""
    params = []
    for i in range(len(LAYER_DIMS) - 1):
        fan_in, fan_out = LAYER_DIMS[i], LAYER_DIMS[i + 1]
        key, kw, kb = jax.random.split(key, 3)
        bound = 1.0 / (fan_in ** 0.5)
        w = jax.random.uniform(kw, (fan_in, fan_out), jnp.float32, -bound, bound)
        b = jax.random.uniform(kb, (1, fan_out), jnp.float32, -bound, bound)
        params.append((w, b))
    return params


def reference_forward(x, params, *, matmul_dtype=jnp.float32):
    """Pure-JAX reference. matmul_dtype=bfloat16 mirrors the kernel's MXU precision."""
    h = x.astype(jnp.float32)
    for i, (w, b) in enumerate(params):
        h = jnp.dot(h.astype(matmul_dtype), w.astype(matmul_dtype),
                    preferred_element_type=jnp.float32) + b
        if i < len(params) - 1:
            h = jnp.maximum(h, 0.0)
    return jax.nn.sigmoid(h).reshape(x.shape[0])


if __name__ == "__main__":
    key = jax.random.PRNGKey(0)
    key, kx1, kx2 = jax.random.split(key, 3)
    params = init_params(key)

    # Small latency-style batch (tile clamps to 128, grid=(1,)).
    x_small = jax.random.normal(kx1, (4, IN_DIM), dtype=jnp.float32)
    out_small = jax.block_until_ready(simple_classifier_forward(x_small, params))
    assert out_small.shape == (4,), f"unexpected output shape {out_small.shape}"
    ref_small_bf16 = reference_forward(x_small, params, matmul_dtype=jnp.bfloat16)
    ref_small_f32 = reference_forward(x_small, params, matmul_dtype=jnp.float32)
    assert jnp.allclose(out_small, ref_small_bf16, atol=1e-4, rtol=1e-4), \
        "small-batch mismatch vs bf16-matmul reference"
    assert jnp.allclose(out_small, ref_small_f32, atol=3e-2), \
        "small-batch drift vs f32 reference too large"

    # Multi-tile grid + ragged batch + non-multiple-of-128 tile_b (rounded up
    # inside the wrapper instead of asserting).
    x_big = jax.random.normal(kx2, (300, IN_DIM), dtype=jnp.float32)
    out_big = jax.block_until_ready(
        simple_classifier_forward(x_big, params, tile_b=100))
    assert out_big.shape == (300,), f"unexpected output shape {out_big.shape}"
    ref_big_bf16 = reference_forward(x_big, params, matmul_dtype=jnp.bfloat16)
    ref_big_f32 = reference_forward(x_big, params, matmul_dtype=jnp.float32)
    assert jnp.allclose(out_big, ref_big_bf16, atol=1e-4, rtol=1e-4), \
        "multi-tile mismatch vs bf16-matmul reference"
    assert jnp.allclose(out_big, ref_big_f32, atol=3e-2), \
        "multi-tile drift vs f32 reference too large"

    print("KERNEL_OK")
</pallas_src>

<mosaic_0001>
module attributes {stable_mosaic.version = 11 : i64} {
  func.func @_mlp_kernel(%arg0: i32, %arg1: memref<128x21xf32, #tpu.memory_space<vmem>>, %arg2: memref<21x42xbf16, #tpu.memory_space<vmem>>, %arg3: memref<1x42xf32, #tpu.memory_space<vmem>>, %arg4: memref<42x63xbf16, #tpu.memory_space<vmem>>, %arg5: memref<1x63xf32, #tpu.memory_space<vmem>>, %arg6: memref<63x126xbf16, #tpu.memory_space<vmem>>, %arg7: memref<1x126xf32, #tpu.memory_space<vmem>>, %arg8: memref<126x63xbf16, #tpu.memory_space<vmem>>, %arg9: memref<1x63xf32, #tpu.memory_space<vmem>>, %arg10: memref<63x21xbf16, #tpu.memory_space<vmem>>, %arg11: memref<1x21xf32, #tpu.memory_space<vmem>>, %arg12: memref<21x7xbf16, #tpu.memory_space<vmem>>, %arg13: memref<1x7xf32, #tpu.memory_space<vmem>>, %arg14: memref<1x7xbf16, #tpu.memory_space<vmem>>, %arg15: memref<1x1xf32, #tpu.memory_space<vmem>>, %arg16: memref<1x1x128xf32, #tpu.memory_space<vmem>>) attributes {dimension_semantics = [#tpu.dimension_semantics<parallel>], iteration_bounds = array<i64: 1>, scalar_prefetch = 0 : i64, scratch_operands = 0 : i64, tpu.core_type = #tpu.core_type<tc>, window_params = [{transform_indices = @transform_0, window_bounds = array<i64: 128, 21>}, {pipeline_mode = #tpu.pipeline_mode<synchronous>, transform_indices = @transform_1, window_bounds = array<i64: 21, 42>}, {pipeline_mode = #tpu.pipeline_mode<synchronous>, transform_indices = @transform_2, window_bounds = array<i64: 1, 42>}, {pipeline_mode = #tpu.pipeline_mode<synchronous>, transform_indices = @transform_3, window_bounds = array<i64: 42, 63>}, {pipeline_mode = #tpu.pipeline_mode<synchronous>, transform_indices = @transform_4, window_bounds = array<i64: 1, 63>}, {pipeline_mode = #tpu.pipeline_mode<synchronous>, transform_indices = @transform_5, window_bounds = array<i64: 63, 126>}, {pipeline_mode = #tpu.pipeline_mode<synchronous>, transform_indices = @transform_6, window_bounds = array<i64: 1, 126>}, {pipeline_mode = #tpu.pipeline_mode<synchronous>, transform_indices = @transform_7, window_bounds = array<i64: 126, 63>}, {pipeline_mode = #tpu.pipeline_mode<synchronous>, transform_indices = @transform_8, window_bounds = array<i64: 1, 63>}, {pipeline_mode = #tpu.pipeline_mode<synchronous>, transform_indices = @transform_9, window_bounds = array<i64: 63, 21>}, {pipeline_mode = #tpu.pipeline_mode<synchronous>, transform_indices = @transform_10, window_bounds = array<i64: 1, 21>}, {pipeline_mode = #tpu.pipeline_mode<synchronous>, transform_indices = @transform_11, window_bounds = array<i64: 21, 7>}, {pipeline_mode = #tpu.pipeline_mode<synchronous>, transform_indices = @transform_12, window_bounds = array<i64: 1, 7>}, {pipeline_mode = #tpu.pipeline_mode<synchronous>, transform_indices = @transform_13, window_bounds = array<i64: 1, 7>}, {pipeline_mode = #tpu.pipeline_mode<synchronous>, transform_indices = @transform_14, window_bounds = array<i64: 1, 1>}, {transform_indices = @transform_15, window_bounds = array<i64: 1, 1, 128>}]} {
    %c0 = arith.constant 0 : index
    %c0_0 = arith.constant 0 : index
    %0 = vector.load %arg1[%c0, %c0_0] : memref<128x21xf32, #tpu.memory_space<vmem>>, vector<128x21xf32>
    %1 = arith.truncf %0 : vector<128x21xf32> to vector<128x21xbf16>
    %c0_1 = arith.constant 0 : index
    %c0_2 = arith.constant 0 : index
    %2 = vector.load %arg2[%c0_1, %c0_2] : memref<21x42xbf16, #tpu.memory_space<vmem>>, vector<21x42xbf16>
    %cst = arith.constant dense<0.000000e+00> : vector<128x42xf32>
    %3 = tpu.matmul %1, %2, %cst {dimension_numbers = #tpu.dot_dimension_numbers<[1], [0], [0], [1], [0, 0, 1, 1], [], []>} : vector<128x21xbf16>, vector<21x42xbf16>, vector<128x42xf32> -> vector<128x42xf32>
    %c0_3 = arith.constant 0 : index
    %c0_4 = arith.constant 0 : index
    %4 = vector.load %arg3[%c0_3, %c0_4] : memref<1x42xf32, #tpu.memory_space<vmem>>, vector<1x42xf32>
    %5 = vector.broadcast %4 : vector<1x42xf32> to vector<128x42xf32>
    %6 = arith.addf %3, %5 : vector<128x42xf32>
    %cst_5 = arith.constant 0.000000e+00 : f32
    %7 = vector.broadcast %cst_5 : f32 to vector<128x42xf32>
    %8 = arith.maximumf %6, %7 : vector<128x42xf32>
    %9 = arith.truncf %8 : vector<128x42xf32> to vector<128x42xbf16>
    %c0_6 = arith.constant 0 : index
    %c0_7 = arith.constant 0 : index
    %10 = vector.load %arg4[%c0_6, %c0_7] : memref<42x63xbf16, #tpu.memory_space<vmem>>, vector<42x63xbf16>
    %cst_8 = arith.constant dense<0.000000e+00> : vector<128x63xf32>
    %11 = tpu.matmul %9, %10, %cst_8 {dimension_numbers = #tpu.dot_dimension_numbers<[1], [0], [0], [1], [0, 0, 1, 1], [], []>} : vector<128x42xbf16>, vector<42x63xbf16>, vector<128x63xf32> -> vector<128x63xf32>
    %c0_9 = arith.constant 0 : index
    %c0_10 = arith.constant 0 : index
    %12 = vector.load %arg5[%c0_9, %c0_10] : memref<1x63xf32, #tpu.memory_space<vmem>>, vector<1x63xf32>
    %13 = vector.broadcast %12 : vector<1x63xf32> to vector<128x63xf32>
    %14 = arith.addf %11, %13 : vector<128x63xf32>
    %cst_11 = arith.constant 0.000000e+00 : f32
    %15 = vector.broadcast %cst_11 : f32 to vector<128x63xf32>
    %16 = arith.maximumf %14, %15 : vector<128x63xf32>
    %17 = arith.truncf %16 : vector<128x63xf32> to vector<128x63xbf16>
    %c0_12 = arith.constant 0 : index
    %c0_13 = arith.constant 0 : index
    %18 = vector.load %arg6[%c0_12, %c0_13] : memref<63x126xbf16, #tpu.memory_space<vmem>>, vector<63x126xbf16>
    %cst_14 = arith.constant dense<0.000000e+00> : vector<128x126xf32>
    %19 = tpu.matmul %17, %18, %cst_14 {dimension_numbers = #tpu.dot_dimension_numbers<[1], [0], [0], [1], [0, 0, 1, 1], [], []>} : vector<128x63xbf16>, vector<63x126xbf16>, vector<128x126xf32> -> vector<128x126xf32>
    %c0_15 = arith.constant 0 : index
    %c0_16 = arith.constant 0 : index
    %20 = vector.load %arg7[%c0_15, %c0_16] : memref<1x126xf32, #tpu.memory_space<vmem>>, vector<1x126xf32>
    %21 = vector.broadcast %20 : vector<1x126xf32> to vector<128x126xf32>
    %22 = arith.addf %19, %21 : vector<128x126xf32>
    %cst_17 = arith.constant 0.000000e+00 : f32
    %23 = vector.broadcast %cst_17 : f32 to vector<128x126xf32>
    %24 = arith.maximumf %22, %23 : vector<128x126xf32>
    %25 = arith.truncf %24 : vector<128x126xf32> to vector<128x126xbf16>
    %c0_18 = arith.constant 0 : index
    %c0_19 = arith.constant 0 : index
    %26 = vector.load %arg8[%c0_18, %c0_19] : memref<126x63xbf16, #tpu.memory_space<vmem>>, vector<126x63xbf16>
    %cst_20 = arith.constant dense<0.000000e+00> : vector<128x63xf32>
    %27 = tpu.matmul %25, %26, %cst_20 {dimension_numbers = #tpu.dot_dimension_numbers<[1], [0], [0], [1], [0, 0, 1, 1], [], []>} : vector<128x126xbf16>, vector<126x63xbf16>, vector<128x63xf32> -> vector<128x63xf32>
    %c0_21 = arith.constant 0 : index
    %c0_22 = arith.constant 0 : index
    %28 = vector.load %arg9[%c0_21, %c0_22] : memref<1x63xf32, #tpu.memory_space<vmem>>, vector<1x63xf32>
    %29 = vector.broadcast %28 : vector<1x63xf32> to vector<128x63xf32>
    %30 = arith.addf %27, %29 : vector<128x63xf32>
    %cst_23 = arith.constant 0.000000e+00 : f32
    %31 = vector.broadcast %cst_23 : f32 to vector<128x63xf32>
    %32 = arith.maximumf %30, %31 : vector<128x63xf32>
    %33 = arith.truncf %32 : vector<128x63xf32> to vector<128x63xbf16>
    %c0_24 = arith.constant 0 : index
    %c0_25 = arith.constant 0 : index
    %34 = vector.load %arg10[%c0_24, %c0_25] : memref<63x21xbf16, #tpu.memory_space<vmem>>, vector<63x21xbf16>
    %cst_26 = arith.constant dense<0.000000e+00> : vector<128x21xf32>
    %35 = tpu.matmul %33, %34, %cst_26 {dimension_numbers = #tpu.dot_dimension_numbers<[1], [0], [0], [1], [0, 0, 1, 1], [], []>} : vector<128x63xbf16>, vector<63x21xbf16>, vector<128x21xf32> -> vector<128x21xf32>
    %c0_27 = arith.constant 0 : index
    %c0_28 = arith.constant 0 : index
    %36 = vector.load %arg11[%c0_27, %c0_28] : memref<1x21xf32, #tpu.memory_space<vmem>>, vector<1x21xf32>
    %37 = vector.broadcast %36 : vector<1x21xf32> to vector<128x21xf32>
    %38 = arith.addf %35, %37 : vector<128x21xf32>
    %cst_29 = arith.constant 0.000000e+00 : f32
    %39 = vector.broadcast %cst_29 : f32 to vector<128x21xf32>
    %40 = arith.maximumf %38, %39 : vector<128x21xf32>
    %41 = arith.truncf %40 : vector<128x21xf32> to vector<128x21xbf16>
    %c0_30 = arith.constant 0 : index
    %c0_31 = arith.constant 0 : index
    %42 = vector.load %arg12[%c0_30, %c0_31] : memref<21x7xbf16, #tpu.memory_space<vmem>>, vector<21x7xbf16>
    %cst_32 = arith.constant dense<0.000000e+00> : vector<128x7xf32>
    %43 = tpu.matmul %41, %42, %cst_32 {dimension_numbers = #tpu.dot_dimension_numbers<[1], [0], [0], [1], [0, 0, 1, 1], [], []>} : vector<128x21xbf16>, vector<21x7xbf16>, vector<128x7xf32> -> vector<128x7xf32>
    %c0_33 = arith.constant 0 : index
    %c0_34 = arith.constant 0 : index
    %44 = vector.load %arg13[%c0_33, %c0_34] : memref<1x7xf32, #tpu.memory_space<vmem>>, vector<1x7xf32>
    %45 = vector.broadcast %44 : vector<1x7xf32> to vector<128x7xf32>
    %46 = arith.addf %43, %45 : vector<128x7xf32>
    %cst_35 = arith.constant 0.000000e+00 : f32
    %47 = vector.broadcast %cst_35 : f32 to vector<128x7xf32>
    %48 = arith.maximumf %46, %47 : vector<128x7xf32>
    %c0_36 = arith.constant 0 : index
    %c0_37 = arith.constant 0 : index
    %49 = vector.load %arg14[%c0_36, %c0_37] : memref<1x7xbf16, #tpu.memory_space<vmem>>, vector<1x7xbf16>
    %50 = arith.truncf %48 : vector<128x7xf32> to vector<128x7xbf16>
    %cst_38 = arith.constant dense<0.000000e+00> : vector<1x128xf32>
    %51 = tpu.matmul %49, %50, %cst_38 {dimension_numbers = #tpu.dot_dimension_numbers<[1], [1], [0], [0], [0, 0, 1, 0], [], []>} : vector<1x7xbf16>, vector<128x7xbf16>, vector<1x128xf32> -> vector<1x128xf32>
    %c0_39 = arith.constant 0 : index
    %c0_40 = arith.constant 0 : index
    %52 = vector.load %arg15[%c0_39, %c0_40] : memref<1x1xf32, #tpu.memory_space<vmem>>, vector<1x1xf32>
    %53 = vector.broadcast %52 : vector<1x1xf32> to vector<1x128xf32>
    %54 = arith.addf %51, %53 : vector<1x128xf32>
    %55 = arith.negf %54 : vector<1x128xf32>
    %56 = math.exp %55 : vector<1x128xf32>
    %cst_41 = arith.constant 1.000000e+00 : f32
    %57 = vector.broadcast %cst_41 : f32 to vector<1x128xf32>
    %58 = arith.addf %57, %56 : vector<1x128xf32>
    %59 = arith.divf %57, %58 : vector<1x128xf32>
    %60 = vector.shape_cast %59 : vector<1x128xf32> to vector<1x1x128xf32>
    %c0_42 = arith.constant 0 : index
    %c0_43 = arith.constant 0 : index
    %c0_44 = arith.constant 0 : index
    %61 = vector.load %arg16[%c0_42, %c0_43, %c0_44] : memref<1x1x128xf32, #tpu.memory_space<vmem>>, vector<1x1x128xf32>
    tpu.vector_store %arg16[%c0_42, %c0_43, %c0_44], %60 {strides = array<i32>} : memref<1x1x128xf32, #tpu.memory_space<vmem>>, vector<1x1x128xf32>,
    return
  }
  func.func @transform_0(%arg0: i32) -> (i32, i32) {
    %c0_i32 = arith.constant 0 : i32
    %c0_i32_0 = arith.constant 0 : i32
    return %arg0, %c0_i32 : i32, i32
  }
  func.func @transform_1(%arg0: i32) -> (i32, i32) {
    %c0_i32 = arith.constant 0 : i32
    %c0_i32_0 = arith.constant 0 : i32
    %c0_i32_1 = arith.constant 0 : i32
    return %c0_i32, %c0_i32_0 : i32, i32
  }
  func.func @transform_2(%arg0: i32) -> (i32, i32) {
    %c0_i32 = arith.constant 0 : i32
    %c0_i32_0 = arith.constant 0 : i32
    %c0_i32_1 = arith.constant 0 : i32
    return %c0_i32, %c0_i32_0 : i32, i32
  }
  func.func @transform_3(%arg0: i32) -> (i32, i32) {
    %c0_i32 = arith.constant 0 : i32
    %c0_i32_0 = arith.constant 0 : i32
    %c0_i32_1 = arith.constant 0 : i32
    return %c0_i32, %c0_i32_0 : i32, i32
  }
  func.func @transform_4(%arg0: i32) -> (i32, i32) {
    %c0_i32 = arith.constant 0 : i32
    %c0_i32_0 = arith.constant 0 : i32
    %c0_i32_1 = arith.constant 0 : i32
    return %c0_i32, %c0_i32_0 : i32, i32
  }
  func.func @transform_5(%arg0: i32) -> (i32, i32) {
    %c0_i32 = arith.constant 0 : i32
    %c0_i32_0 = arith.constant 0 : i32
    %c0_i32_1 = arith.constant 0 : i32
    return %c0_i32, %c0_i32_0 : i32, i32
  }
  func.func @transform_6(%arg0: i32) -> (i32, i32) {
    %c0_i32 = arith.constant 0 : i32
    %c0_i32_0 = arith.constant 0 : i32
    %c0_i32_1 = arith.constant 0 : i32
    return %c0_i32, %c0_i32_0 : i32, i32
  }
  func.func @transform_7(%arg0: i32) -> (i32, i32) {
    %c0_i32 = arith.constant 0 : i32
    %c0_i32_0 = arith.constant 0 : i32
    %c0_i32_1 = arith.constant 0 : i32
    return %c0_i32, %c0_i32_0 : i32, i32
  }
  func.func @transform_8(%arg0: i32) -> (i32, i32) {
    %c0_i32 = arith.constant 0 : i32
    %c0_i32_0 = arith.constant 0 : i32
    %c0_i32_1 = arith.constant 0 : i32
    return %c0_i32, %c0_i32_0 : i32, i32
  }
  func.func @transform_9(%arg0: i32) -> (i32, i32) {
    %c0_i32 = arith.constant 0 : i32
    %c0_i32_0 = arith.constant 0 : i32
    %c0_i32_1 = arith.constant 0 : i32
    return %c0_i32, %c0_i32_0 : i32, i32
  }
  func.func @transform_10(%arg0: i32) -> (i32, i32) {
    %c0_i32 = arith.constant 0 : i32
    %c0_i32_0 = arith.constant 0 : i32
    %c0_i32_1 = arith.constant 0 : i32
    return %c0_i32, %c0_i32_0 : i32, i32
  }
  func.func @transform_11(%arg0: i32) -> (i32, i32) {
    %c0_i32 = arith.constant 0 : i32
    %c0_i32_0 = arith.constant 0 : i32
    %c0_i32_1 = arith.constant 0 : i32
    return %c0_i32, %c0_i32_0 : i32, i32
  }
  func.func @transform_12(%arg0: i32) -> (i32, i32) {
    %c0_i32 = arith.constant 0 : i32
    %c0_i32_0 = arith.constant 0 : i32
    %c0_i32_1 = arith.constant 0 : i32
    return %c0_i32, %c0_i32_0 : i32, i32
  }
  func.func @transform_13(%arg0: i32) -> (i32, i32) {
    %c0_i32 = arith.constant 0 : i32
    %c0_i32_0 = arith.constant 0 : i32
    %c0_i32_1 = arith.constant 0 : i32
    return %c0_i32, %c0_i32_0 : i32, i32
  }
  func.func @transform_14(%arg0: i32) -> (i32, i32) {
    %c0_i32 = arith.constant 0 : i32
    %c0_i32_0 = arith.constant 0 : i32
    %c0_i32_1 = arith.constant 0 : i32
    return %c0_i32, %c0_i32_0 : i32, i32
  }
  func.func @transform_15(%arg0: i32) -> (i32, i32, i32) {
    %c0_i32 = arith.constant 0 : i32
    %c0_i32_0 = arith.constant 0 : i32
    %c0_i32_1 = arith.constant 0 : i32
    return %arg0, %c0_i32, %c0_i32_0 : i32, i32, i32
  }
}

</mosaic_0001>

<bundles_post_ra>
// kernel: tpu_custom_call.1
= control target key start
LH: loop header
LB: loop body
LE: loop exit
PB: predicated region body
PF: predicated region fallthrough
CT: control target
= control target key end

     0   :  { %s1994_s0 = inlined_call_operand.vmem [shape: f32[128,21], index: 0, kind: input, shape index: {}]   ;;  %s1995_s1 = inlined_call_operand.vmem [shape: bf16[21,42], index: 1, kind: input, shape index: {}]   ;;  %s1996_s2 = inlined_call_operand.vmem [shape: f32[1,42], index: 2, kind: input, shape index: {}]   ;;  %s1997_s3 = inlined_call_operand.vmem [shape: bf16[42,63], index: 3, kind: input, shape index: {}]   ;;  %s1998_s4 = inlined_call_operand.vmem [shape: f32[1,63], index: 4, kind: input, shape index: {}]   ;;  %s1999_s5 = inlined_call_operand.vmem [shape: bf16[63,126], index: 5, kind: input, shape index: {}]   ;;  %s2000_s6 = inlined_call_operand.vmem [shape: f32[1,126], index: 6, kind: input, shape index: {}]   ;;  %s2001_s7 = inlined_call_operand.vmem [shape: bf16[126,63], index: 7, kind: input, shape index: {}]   ;;  %s2002_s8 = inlined_call_operand.vmem [shape: f32[1,63], index: 8, kind: input, shape index: {}]   ;;  %s2003_s9 = inlined_call_operand.vmem [shape: bf16[63,21], index: 9, kind: input, shape index: {}]   ;;  %s2004_s10 = inlined_call_operand.vmem [shape: f32[1,21], index: 10, kind: input, shape index: {}]   ;;  %s2005_s11 = inlined_call_operand.vmem [shape: bf16[21,7], index: 11, kind: input, shape index: {}]   ;;  %s2006_s12 = inlined_call_operand.vmem [shape: f32[1,7], index: 12, kind: input, shape index: {}]   ;;  %s2007_s13 = inlined_call_operand.vmem [shape: bf16[1,7], index: 13, kind: input, shape index: {}]   ;;  %s2008_s14 = inlined_call_operand.<no memory space> [shape: f32[1,1], index: 14, kind: input, shape index: {}]   ;;  %s2009_s15 = inlined_call_operand.hbm [shape: f32[1,1,128], index: 15, kind: output, shape index: {}]  }
   0x1   :  { %v20_v0 = vstv %s2008_s14 }
   0x2   :  { %21 = vst [vmem:[#allocation2] sm:$0x1] %v20_v0 }
   0x3   :  { %v1626_v1 = vld [vmem:[%s1995_s1] sm:$0xff]   ;;  %vm122_vm0 = vcmask 1041408   ;;  %v1627_v2 = vld [vmem:[%s1995_s1 + $0x8] ss:$0 sps:$4 sm:$0x77]   ;;  %vm123_vm1 = vcmask 1042432  }
   0x4   :  { %1452 = vmatprep.subr.bf16.mxu0 %v1626_v1  ;;  %v54_v3 = vld [vmem:[%s1994_s0] sm:$0xff]  ;;  %v55_v4 = vld [vmem:[%s1994_s0 + $0x8] sm:$0xff]  ;;  %vm97_vm2 = vcmask 171008   ;;  %1614 = vmatprep.subr.bf16.mxu1 %v1626_v1  ;;  %v1677_v5 = vmov 65535   ;;  %v56_v8 = vld [vmem:[%s1994_s0 + $0x10] sm:$0xff] }
   0x5   :  { %1453 = vmatpush3.bf16.msra.mxu0 %v1626_v1  ;;  %v124_v6 = vsel %vm122_vm0, 4294967295, %v1677_v5  ;;  %v70_v7 = vpack.c.bf16 %v55_v4, %v54_v3  ;;  %v57_v9 = vld [vmem:[%s1994_s0 + $0x18] sm:$0xff]  ;;  %1616 = vmatpush3.bf16.msra.mxu1 %v1626_v1  ;;  %v58_v11 = vld [vmem:[%s1994_s0 + $0x20] sm:$0xff]  ;;  %v59_v12 = vld [vmem:[%s1994_s0 + $0x28] sm:$0xff] }
   0x6   :  { %v1784_v10 = vsel %vm123_vm1, %v124_v6, 0  ;;  %v62_v13 = vld [vmem:[%s1994_s0 + $0x40] sm:$0xff]  ;;  %v63_v15 = vld [vmem:[%s1994_s0 + $0x48] sm:$0xff]  ;;  %v64_v16 = vld [vmem:[%s1994_s0 + $0x50] sm:$0xff]  ;;  %v71_v21 = vpack.c.bf16 %v57_v9, %v56_v8  ;;  %v72_v23 = vpack.c.bf16 %v59_v12, %v58_v11 }
   0x7   :  { %v127_v14 = vand.u32 %v1627_v2, %v1784_v10  ;;  %1456 = vmatprep.mubr.msk.bf16.mxu0 %vm97_vm2, %v70_v7  ;;  %v65_v17 = vld [vmem:[%s1994_s0 + $0x58] sm:$0xff]  ;;  %v74_v18 = vpack.c.bf16 %v63_v15, %v62_v13  ;;  %v66_v19 = vld [vmem:[%s1994_s0 + $0x60] sm:$0xff]  ;;  %v67_v20 = vld [vmem:[%s1994_s0 + $0x68] sm:$0xff] }
   0x8   :  { %v75_v22 = vpack.c.bf16 %v65_v17, %v64_v16  ;;  %v76_v24 = vpack.c.bf16 %v67_v20, %v66_v19  ;;  %v1628_v25 = vld [vmem:[%s1997_s3] sm:$0xff]   ;;  %v60_v26 = vld [vmem:[%s1994_s0 + $0x30] sm:$0xff]  ;;  %v61_v27 = vld [vmem:[%s1994_s0 + $0x38] sm:$0xff] }
   0x9   :  { %1454 = vmatprep.subr.bf16.mxu0 %v127_v14  ;;  %1615 = vmatprep.subr.bf16.mxu1 %v127_v14  ;;  %v68_v28 = vld [vmem:[%s1994_s0 + $0x70] sm:$0xff]  ;;  %v69_v29 = vld [vmem:[%s1994_s0 + $0x78] sm:$0xff]  ;;  %v73_v30 = vpack.c.bf16 %v61_v27, %v60_v26 }
   0xa   :  { %1455 = vmatpush3.bf16.msra.mxu0 %v127_v14  ;;  %1617 = vmatpush3.bf16.msra.mxu1 %v127_v14  ;;  %v77_v31 = vpack.c.bf16 %v69_v29, %v68_v28 }
   0xb   :  { %1464 = vmatprep.mubr.msk.bf16.mxu1 %vm97_vm2, %v74_v18  ;;  %1472 = vmatprep.subr.bf16.mxu1 %v1628_v25 }
   0xd   :  { %1457 = vmatmul.mubr.msk.bf16.vlgmr.msra.gmra.mrb[0].mxu0 %vm97_vm2, %v71_v21  ;;  %1465 = vmatmul.mubr.msk.bf16.vlgmr.msra.gmra.mrb[0].mxu1 %vm97_vm2, %v75_v22 }
   0xe   :  { %1460 = vmatprep.mubr.msk.bf16.mxu0 %vm97_vm2, %v72_v23  ;;  %1468 = vmatprep.mubr.msk.bf16.mxu1 %vm97_vm2, %v76_v24 }
   0xf   :  { %1473 = vmatpush3.bf16.msra.mxu1 %v1628_v25 }
  0x15   :  { %1461 = vmatmul.mubr.msk.bf16.gmra.mrb[4].mxu0 %vm97_vm2, %v73_v30  ;;  %1469 = vmatmul.mubr.msk.bf16.gmra.mrb[4].mxu1 %vm97_vm2, %v77_v31 }
  0x16   :  { %22 = vsyncpa [#allocation4], 0  ;;  %v1629_v32 = vld [vmem:[%s1997_s3 + $0x8] sm:$0xff]   ;;  %v1630_v33 = vld [vmem:[%s1997_s3 + $0x10] sm:$0x1f]   ;;  %vm305_vm3 = vcmask 1044480  }
  0x17   :  { %1474 = vmatprep.subr.bf16.mxu1 %v1629_v32  ;;  %v307_v34 = vsel %vm305_vm3, %v1630_v33, 0  ;;  %v1631_v35 = vld [vmem:[%s1999_s5] sm:$0xff]   ;;  %v1632_v36 = vld [vmem:[%s1999_s5 + $0x8] sm:$0xff]   ;;  %vm280_vm4 = vcmask 343040   ;;  %vm493_vm5 = vcmask 1046528   ;;  %vm494_vm6 = vcmask 1047552  }
  0x18   :  { %1475 = vmatpush3.bf16.msra.mxu1 %v1629_v32  ;;  %1494 = vmatprep.subr.bf16.mxu0 %v1631_v35  ;;  %v1293_v37 = vld [vmem:[%s1996_s2] ss:$0 sm:$0xff]  ;;  %v1633_v32 = vld [vmem:[%s1999_s5 + $0x10] sm:$0xff]   ;;  %vm468_vm7 = vcmask 515072   ;;  %vm691_vm8 = vcmask 1031168   ;;  %vm1679_vm9 = vmmov 0  }
  0x19   :  { %1618 = vmatprep.subr.msk.bf16.mxu1 %vm305_vm3, %v1630_v33  ;;  %1495 = vmatpush3.bf16.msra.mxu0 %v1631_v35  ;;  %v1634_v33 = vld [vmem:[%s1999_s5 + $0x18] sm:$0xff]   ;;  %vm1204_vm10 = vcmask 56320   ;;  %s1681_s27 = smov [#allocation3]  }
  0x1a   :  { %1496 = vmatprep.subr.bf16.mxu0 %v1632_v36  ;;  %s1285_s14 = sshll.u32 %s1681_s27, 4  ;;  %s1286_s14 = int_to_ptr.vmem [resolvable:$true] %s1285_s14 }
  0x1b   :  { %s1657_s28 = scalar_lea.vmem %s1286_s14, 32  ;;  %p1658_p1 = scmp.lt.s32.totalorder %s1286_s14, %s1286_s14 }
  0x1c   :  { %1477 = vmatpush3.bf16.msra.mxu1 %v307_v34  ;;  %v495_v34 = vsel %vm493_vm5, 4294967295, %v1677_v5  ;;  %v1637_v5 = vld [vmem:[%s2001_s7 + $0x10] sm:$0xff]  }
  0x1d   :  { %1497 = vmatpush3.bf16.msra.mxu0 %v1632_v36  ;;  %v1865_v35 = vsel %vm494_vm6, %v495_v34, 0 }
  0x1e   :  { %1498 = vmatprep.subr.bf16.mxu0 %v1633_v32  ;;  %v498_v36 = vand.u32 %v1634_v33, %v1865_v35 }
  0x21   :  { %1499 = vmatpush3.bf16.msra.mxu0 %v1633_v32 }
  0x22   :  { %1500 = vmatprep.subr.bf16.mxu0 %v498_v36 }
  0x25   :  { %1501 = vmatpush3.bf16.msra.mxu0 %v498_v36 }
  0xe0   :  { %v1458_v38 = vpop.f32.mrb[0].mxu0  ;;  %v1466_v39 = vpop.f32.mrb[0].mxu1 }
  0xe1   :  { %v172_v40 = vadd.f32 %v1458_v38, %v1293_v37  ;;  %v163_v41 = vpop.f32.mrb[1].mxu0  ;;  %v204_v42 = vadd.f32 %v1466_v39, %v1293_v37  ;;  %v195_v43 = vpop.f32.mrb[1].mxu1  ;;  %v1636_v38 = vld [vmem:[%s2001_s7 + $0x8] sm:$0xff]   ;;  %v1638_v39 = vld [vmem:[%s2001_s7 + $0x18] sm:$0xff]  }
  0xe2   :  { %v164_v44 = vadd.f32 %v1293_v37, %v163_v41  ;;  %v1459_v45 = vpop.f32.mrb[2].mxu0  ;;  %v196_v46 = vadd.f32 %v1293_v37, %v195_v43  ;;  %v1467_v47 = vpop.f32.mrb[2].mxu1  ;;  %v1640_v41 = vld [vmem:[%s2001_s7 + $0x28] sm:$0xff]  }
  0xe3   :  { %v175_v48 = vadd.f32 %v1459_v45, %v1293_v37  ;;  %v166_v49 = vpop.f32.mrb[3].mxu0  ;;  %v236_v50 = vmax.f32 %v204_v42, 0.0  ;;  %v207_v51 = vadd.f32 %v1467_v47, %v1293_v37  ;;  %v198_v52 = vpop.f32.mrb[3].mxu1  ;;  %v228_v56 = vmax.f32 %v172_v40, 0.0  ;;  %v1639_v40 = vld [vmem:[%s2001_s7 + $0x20] sm:$0xff]  }
  0xe4   :  { %v167_v53 = vadd.f32 %v1293_v37, %v166_v49  ;;  %v234_v54 = vmax.f32 %v196_v46, 0.0  ;;  %v199_v55 = vadd.f32 %v1293_v37, %v198_v52  ;;  %v226_v59 = vmax.f32 %v164_v44, 0.0  ;;  %v1304_v42 = vld [vmem:[%s1998_s4] ss:$0 sm:$0xff] }
  0xe5   :  { %v229_v57 = vmax.f32 %v175_v48, 0.0  ;;  %v237_v58 = vmax.f32 %v207_v51, 0.0 }
  0xe6   :  { %v227_v60 = vmax.f32 %v167_v53, 0.0  ;;  %v235_v61 = vmax.f32 %v199_v55, 0.0 }
  0xe7   :  { %v243_v62 = vpack.c.bf16 %v229_v57, %v228_v56  ;;  %v247_v63 = vpack.c.bf16 %v237_v58, %v236_v50 }
  0xe8   :  { %v242_v0 = vpack.c.bf16 %v227_v60, %v226_v59  ;;  %v1462_v1 = vpop.f32.mrb[4].mxu0  ;;  %v246_v2 = vpack.c.bf16 %v235_v61, %v234_v54  ;;  %v1470_v3 = vpop.f32.mrb[4].mxu1 }
  0xe9   :  { %v188_v4 = vadd.f32 %v1462_v1, %v1293_v37  ;;  %v179_v6 = vpop.f32.mrb[5].mxu0  ;;  %v220_v7 = vadd.f32 %v1470_v3, %v1293_v37  ;;  %v211_v8 = vpop.f32.mrb[5].mxu1 }
  0xea   :  { %v180_v9 = vadd.f32 %v1293_v37, %v179_v6  ;;  %v1463_v11 = vpop.f32.mrb[6].mxu0  ;;  %1478 = vmatprep.mubr.msk.bf16.mxu1 %vm280_vm4, %v242_v0  ;;  %v212_v12 = vadd.f32 %v1293_v37, %v211_v8  ;;  %v1471_v13 = vpop.f32.mrb[6].mxu1 }
  0xeb   :  { %v232_v14 = vmax.f32 %v188_v4, 0.0  ;;  %v191_v15 = vadd.f32 %v1463_v11, %v1293_v37  ;;  %v182_v16 = vpop.f32.mrb[7].mxu0  ;;  %1479 = vmatmul.mubr.msk.bf16.vlgmr.msra.gmra.mrb[8].mxu1 %vm280_vm4, %v243_v62  ;;  %v240_v17 = vmax.f32 %v220_v7, 0.0  ;;  %v223_v18 = vadd.f32 %v1471_v13, %v1293_v37  ;;  %v214_v19 = vpop.f32.mrb[7].mxu1 }
  0xec   :  { %v230_v20 = vmax.f32 %v180_v9, 0.0  ;;  %v183_v21 = vadd.f32 %v1293_v37, %v182_v16  ;;  %v238_v22 = vmax.f32 %v212_v12, 0.0  ;;  %v215_v23 = vadd.f32 %v1293_v37, %v214_v19  ;;  %v1635_v37 = vld [vmem:[%s2001_s7] sm:$0xff]  }
  0xed   :  { %v233_v24 = vmax.f32 %v191_v15, 0.0  ;;  %v241_v25 = vmax.f32 %v223_v18, 0.0  ;;  %1518 = vmatprep.subr.bf16.mxu1 %v1635_v37 }
  0xee   :  { %v231_v26 = vmax.f32 %v183_v21, 0.0  ;;  %v239_v27 = vmax.f32 %v215_v23, 0.0  ;;  %1519 = vmatpush3.bf16.msra.mxu1 %v1635_v37 }
  0xef   :  { %v245_v28 = vpack.c.bf16 %v233_v24, %v232_v14  ;;  %v249_v29 = vpack.c.bf16 %v241_v25, %v240_v17  ;;  %1520 = vmatprep.subr.bf16.mxu1 %v1636_v38 }
  0xf0   :  { %v244_v30 = vpack.c.bf16 %v231_v26, %v230_v20  ;;  %v248_v31 = vpack.c.bf16 %v239_v27, %v238_v22 }
  0xf2   :  { %1482 = vmatprep.mubr.msk.bf16.mxu1 %vm280_vm4, %v244_v30  ;;  %1521 = vmatpush3.bf16.msra.mxu1 %v1636_v38  ;;  %v1641_v38 = vld [vmem:[%s2001_s7 + $0x30] sm:$0xff]  }
  0xf3   :  { %1483 = vmatmul.mubr.msk.bf16.gmra.mrb[12].mxu1 %vm280_vm4, %v245_v28  ;;  %1522 = vmatprep.subr.bf16.mxu1 %v1637_v5 }
  0xf4   :  { %1486 = vmatprep.mubr.msk.bf16.mxu1 %vm280_vm4, %v246_v2 }
  0xf6   :  { %1523 = vmatpush3.bf16.msra.mxu1 %v1637_v5  ;;  %v1642_v5 = vld [vmem:[%s2001_s7 + $0x38] sm:$0x7f]  }
  0xf7   :  { %1524 = vmatprep.subr.bf16.mxu1 %v1638_v39 }
  0xfa   :  { %1525 = vmatpush3.bf16.msra.mxu1 %v1638_v39  ;;  %v717_v39 = vsel %vm493_vm5, %v1642_v5, 0 }
  0xfb   :  { %1487 = vmatmul.mubr.msk.bf16.gmra.mrb[16].mxu1 %vm280_vm4, %v247_v63  ;;  %1526 = vmatprep.subr.bf16.mxu1 %v1639_v40 }
  0xfc   :  { %1490 = vmatprep.mubr.msk.bf16.mxu1 %vm280_vm4, %v248_v31 }
  0xfe   :  { %1527 = vmatpush3.bf16.msra.mxu1 %v1639_v40  ;;  %v1643_v40 = vld [vmem:[%s2003_s9] sm:$0xff]  }
  0xff   :  { %1528 = vmatprep.subr.bf16.mxu1 %v1640_v41  ;;  %1550 = vmatprep.subr.bf16.mxu0 %v1643_v40 }
 0x102   :  { %1529 = vmatpush3.bf16.msra.mxu1 %v1640_v41  ;;  %v1644_v41 = vld [vmem:[%s2003_s9 + $0x8] sm:$0xff]  }
 0x103   :  { %1491 = vmatmul.mubr.msk.bf16.gmra.mrb[20].mxu1 %vm280_vm4, %v249_v29  ;;  %1530 = vmatprep.subr.bf16.mxu1 %v1641_v38 }
 0x106   :  { %1531 = vmatpush3.bf16.msra.mxu1 %v1641_v38 }
 0x107   :  { %1619 = vmatprep.subr.msk.bf16.mxu1 %vm493_vm5, %v1642_v5  ;;  %v1646_v5 = vld [vmem:[%s2003_s9 + $0x18] sm:$0xff]  }
 0x10a   :  { %1533 = vmatpush3.bf16.msra.mxu1 %v717_v39  ;;  %v903_v39 = vand.u32 %v1646_v5, %v1865_v35  ;;  %v1329_v35 = vld [vmem:[%s2002_s8] ss:$0 sm:$0xff] }
 0x1be   :  { %v1480_v43 = vpop.f32.mrb[8].mxu1 }
 0x1bf   :  { %v352_v44 = vadd.f32 %v1480_v43, %v1304_v42  ;;  %v343_v45 = vpop.f32.mrb[9].mxu1  ;;  %v1316_v43 = vld [vmem:[%s2000_s6] ss:$0 sm:$0xff] }
 0x1c0   :  { %v344_v46 = vadd.f32 %v1304_v42, %v343_v45  ;;  %v1481_v47 = vpop.f32.mrb[10].mxu1 }
 0x1c1   :  { %v355_v48 = vadd.f32 %v1481_v47, %v1304_v42  ;;  %v346_v49 = vpop.f32.mrb[11].mxu1  ;;  %v408_v51 = vmax.f32 %v352_v44, 0.0 }
 0x1c2   :  { %v347_v50 = vadd.f32 %v1304_v42, %v346_v49  ;;  %v406_v53 = vmax.f32 %v344_v46, 0.0 }
 0x1c3   :  { %v409_v52 = vmax.f32 %v355_v48, 0.0 }
 0x1c4   :  { %v407_v54 = vmax.f32 %v347_v50, 0.0 }
 0x1c5   :  { %v423_v55 = vpack.c.bf16 %v409_v52, %v408_v51 }
 0x1c6   :  { %v422_v56 = vpack.c.bf16 %v407_v54, %v406_v53  ;;  %v1484_v57 = vpop.f32.mrb[12].mxu1 }
 0x1c7   :  { %v368_v58 = vadd.f32 %v1484_v57, %v1304_v42  ;;  %v359_v59 = vpop.f32.mrb[13].mxu1 }
 0x1c8   :  { %v360_v60 = vadd.f32 %v1304_v42, %v359_v59  ;;  %v1485_v61 = vpop.f32.mrb[14].mxu1  ;;  %1502 = vmatprep.mubr.msk.bf16.mxu0 %vm468_vm7, %v422_v56 }
 0x1c9   :  { %v412_v62 = vmax.f32 %v368_v58, 0.0  ;;  %v371_v63 = vadd.f32 %v1485_v61, %v1304_v42  ;;  %v362_v0 = vpop.f32.mrb[15].mxu1  ;;  %1503 = vmatmul.mubr.msk.bf16.vlgmr.msra.gmra.mrb[8].mxu0 %vm468_vm7, %v423_v55 }
 0x1ca   :  { %v410_v1 = vmax.f32 %v360_v60, 0.0  ;;  %v363_v2 = vadd.f32 %v1304_v42, %v362_v0  ;;  %1551 = vmatpush3.bf16.msra.mxu0 %v1643_v40  ;;  %v1647_v40 = vld [vmem:[%s2005_s11] sm:$0xff]  }
 0x1cb   :  { %v413_v3 = vmax.f32 %v371_v63, 0.0  ;;  %1552 = vmatprep.subr.bf16.mxu0 %v1644_v41  ;;  %1574 = vmatprep.subr.bf16.mxu1 %v1647_v40 }
 0x1cc   :  { %v411_v4 = vmax.f32 %v363_v2, 0.0 }
 0x1cd   :  { %v425_v6 = vpack.c.bf16 %v413_v3, %v412_v62 }
 0x1ce   :  { %v424_v7 = vpack.c.bf16 %v411_v4, %v410_v1  ;;  %v1488_v8 = vpop.f32.mrb[16].mxu1  ;;  %1553 = vmatpush3.bf16.msra.mxu0 %v1644_v41  ;;  %v1648_v41 = vld [vmem:[%s2005_s11 + $0x8] ss:$0 sps:$4 sm:$0x77]  }
 0x1cf   :  { %v384_v9 = vadd.f32 %v1488_v8, %v1304_v42  ;;  %v375_v11 = vpop.f32.mrb[17].mxu1 }
 0x1d0   :  { %v376_v12 = vadd.f32 %v1304_v42, %v375_v11  ;;  %v1489_v13 = vpop.f32.mrb[18].mxu1  ;;  %1506 = vmatprep.mubr.msk.bf16.mxu0 %vm468_vm7, %v424_v7 }
 0x1d1   :  { %v416_v14 = vmax.f32 %v384_v9, 0.0  ;;  %v387_v15 = vadd.f32 %v1489_v13, %v1304_v42  ;;  %v378_v16 = vpop.f32.mrb[19].mxu1  ;;  %1507 = vmatmul.mubr.msk.bf16.gmra.mrb[12].mxu0 %vm468_vm7, %v425_v6 }
 0x1d2   :  { %v414_v17 = vmax.f32 %v376_v12, 0.0  ;;  %v379_v18 = vadd.f32 %v1304_v42, %v378_v16 }
 0x1d3   :  { %v417_v19 = vmax.f32 %v387_v15, 0.0 }
 0x1d4   :  { %v415_v20 = vmax.f32 %v379_v18, 0.0 }
 0x1d5   :  { %v427_v21 = vpack.c.bf16 %v417_v19, %v416_v14 }
 0x1d6   :  { %v426_v22 = vpack.c.bf16 %v415_v20, %v414_v17  ;;  %v1492_v23 = vpop.f32.mrb[20].mxu1 }
 0x1d7   :  { %v400_v24 = vadd.f32 %v1492_v23, %v1304_v42  ;;  %v391_v25 = vpop.f32.mrb[21].mxu1 }
 0x1d8   :  { %v392_v26 = vadd.f32 %v1304_v42, %v391_v25  ;;  %1510 = vmatprep.mubr.msk.bf16.mxu0 %vm468_vm7, %v426_v22  ;;  %v1493_v27 = vpop.f32.mrb[22].mxu1 }
 0x1d9   :  { %v420_v28 = vmax.f32 %v400_v24, 0.0  ;;  %v403_v29 = vadd.f32 %v1493_v27, %v1304_v42  ;;  %1511 = vmatmul.mubr.msk.bf16.gmra.mrb[16].mxu0 %vm468_vm7, %v427_v21  ;;  %v394_v30 = vpop.f32.mrb[23].mxu1 }
 0x1da   :  { %v418_v31 = vmax.f32 %v392_v26, 0.0  ;;  %v395_v32 = vadd.f32 %v1304_v42, %v394_v30  ;;  %v1645_v42 = vld [vmem:[%s2003_s9 + $0x10] sm:$0xff]  }
 0x1db   :  { %v421_v33 = vmax.f32 %v403_v29, 0.0  ;;  %1554 = vmatprep.subr.bf16.mxu0 %v1645_v42 }
 0x1dc   :  { %v419_v34 = vmax.f32 %v395_v32, 0.0  ;;  %1555 = vmatpush3.bf16.msra.mxu0 %v1645_v42  ;;  %v1070_v42 = vand.u32 %v1648_v41, %v1784_v10 }
 0x1dd   :  { %v429_v36 = vpack.c.bf16 %v421_v33, %v420_v28  ;;  %1556 = vmatprep.subr.bf16.mxu0 %v903_v39 }
 0x1de   :  { %v428_v37 = vpack.c.bf16 %v419_v34, %v418_v31 }
 0x1e0   :  { %1514 = vmatprep.mubr.msk.bf16.mxu0 %vm468_vm7, %v428_v37  ;;  %1557 = vmatpush3.bf16.msra.mxu0 %v903_v39 }
 0x1e1   :  { %1515 = vmatmul.mubr.msk.bf16.gmra.mrb[20].mxu0 %vm468_vm7, %v429_v36 }
 0x29c   :  { %v1504_v44 = vpop.f32.mrb[8].mxu0 }
 0x29d   :  { %v543_v45 = vadd.f32 %v1504_v44, %v1316_v43  ;;  %v534_v46 = vpop.f32.mrb[9].mxu0 }
 0x29e   :  { %v535_v47 = vadd.f32 %v1316_v43, %v534_v46  ;;  %v1505_v48 = vpop.f32.mrb[10].mxu0 }
 0x29f   :  { %v546_v49 = vadd.f32 %v1505_v48, %v1316_v43  ;;  %v537_v50 = vpop.f32.mrb[11].mxu0  ;;  %v599_v52 = vmax.f32 %v543_v45, 0.0 }
 0x2a0   :  { %v538_v51 = vadd.f32 %v1316_v43, %v537_v50  ;;  %v597_v54 = vmax.f32 %v535_v47, 0.0 }
 0x2a1   :  { %v600_v53 = vmax.f32 %v546_v49, 0.0 }
 0x2a2   :  { %v598_v55 = vmax.f32 %v538_v51, 0.0 }
 0x2a3   :  { %v614_v56 = vpack.c.bf16 %v600_v53, %v599_v52 }
 0x2a4   :  { %v613_v57 = vpack.c.bf16 %v598_v55, %v597_v54  ;;  %v1508_v58 = vpop.f32.mrb[12].mxu0 }
 0x2a5   :  { %v559_v59 = vadd.f32 %v1508_v58, %v1316_v43  ;;  %v550_v60 = vpop.f32.mrb[13].mxu0 }
 0x2a6   :  { %v551_v61 = vadd.f32 %v1316_v43, %v550_v60  ;;  %v1509_v62 = vpop.f32.mrb[14].mxu0  ;;  %1534 = vmatprep.mubr.msk.bf16.mxu1 %vm691_vm8, %v613_v57 }
 0x2a7   :  { %v562_v63 = vadd.f32 %v1509_v62, %v1316_v43  ;;  %v553_v0 = vpop.f32.mrb[15].mxu0  ;;  %1535 = vmatmul.mubr.msk.bf16.vlgmr.msra.gmra.mrb[24].mxu1 %vm691_vm8, %v614_v56  ;;  %v603_v2 = vmax.f32 %v559_v59, 0.0 }
 0x2a8   :  { %v554_v1 = vadd.f32 %v1316_v43, %v553_v0  ;;  %v601_v4 = vmax.f32 %v551_v61, 0.0  ;;  %1575 = vmatpush3.bf16.msra.mxu1 %v1647_v40 }
 0x2a9   :  { %v604_v3 = vmax.f32 %v562_v63, 0.0  ;;  %1576 = vmatprep.subr.bf16.mxu1 %v1070_v42 }
 0x2aa   :  { %v602_v6 = vmax.f32 %v554_v1, 0.0 }
 0x2ab   :  { %v616_v7 = vpack.c.bf16 %v604_v3, %v603_v2 }
 0x2ac   :  { %v615_v8 = vpack.c.bf16 %v602_v6, %v601_v4  ;;  %v1512_v9 = vpop.f32.mrb[16].mxu0  ;;  %1577 = vmatpush3.bf16.msra.mxu1 %v1070_v42 }
 0x2ad   :  { %v575_v11 = vadd.f32 %v1512_v9, %v1316_v43  ;;  %v566_v12 = vpop.f32.mrb[17].mxu0 }
 0x2ae   :  { %v567_v13 = vadd.f32 %v1316_v43, %v566_v12  ;;  %v1513_v14 = vpop.f32.mrb[18].mxu0  ;;  %1538 = vmatprep.mubr.msk.bf16.mxu1 %vm691_vm8, %v615_v8 }
 0x2af   :  { %v607_v15 = vmax.f32 %v575_v11, 0.0  ;;  %v578_v16 = vadd.f32 %v1513_v14, %v1316_v43  ;;  %v569_v17 = vpop.f32.mrb[19].mxu0  ;;  %1539 = vmatmul.mubr.msk.bf16.gmra.mrb[28].mxu1 %vm691_vm8, %v616_v7 }
 0x2b0   :  { %v605_v18 = vmax.f32 %v567_v13, 0.0  ;;  %v570_v19 = vadd.f32 %v1316_v43, %v569_v17 }
 0x2b1   :  { %v608_v20 = vmax.f32 %v578_v16, 0.0 }
 0x2b2   :  { %v606_v21 = vmax.f32 %v570_v19, 0.0 }
 0x2b3   :  { %v618_v22 = vpack.c.bf16 %v608_v20, %v607_v15 }
 0x2b4   :  { %v617_v23 = vpack.c.bf16 %v606_v21, %v605_v18  ;;  %v1516_v24 = vpop.f32.mrb[20].mxu0 }
 0x2b5   :  { %v591_v25 = vadd.f32 %v1516_v24, %v1316_v43  ;;  %v582_v26 = vpop.f32.mrb[21].mxu0 }
 0x2b6   :  { %v583_v27 = vadd.f32 %v1316_v43, %v582_v26  ;;  %1542 = vmatprep.mubr.msk.bf16.mxu1 %vm691_vm8, %v617_v23  ;;  %v1517_v28 = vpop.f32.mrb[22].mxu0 }
 0x2b7   :  { %v611_v29 = vmax.f32 %v591_v25, 0.0  ;;  %v594_v30 = vadd.f32 %v1517_v28, %v1316_v43  ;;  %1543 = vmatmul.mubr.msk.bf16.gmra.mrb[32].mxu1 %vm691_vm8, %v618_v22  ;;  %v585_v31 = vpop.f32.mrb[23].mxu0 }
 0x2b8   :  { %v609_v32 = vmax.f32 %v583_v27, 0.0  ;;  %v586_v33 = vadd.f32 %v1316_v43, %v585_v31 }
 0x2b9   :  { %v612_v34 = vmax.f32 %v594_v30, 0.0 }
 0x2ba   :  { %v610_v36 = vmax.f32 %v586_v33, 0.0 }
 0x2bb   :  { %v620_v37 = vpack.c.bf16 %v612_v34, %v611_v29 }
 0x2bc   :  { %v619_v38 = vpack.c.bf16 %v610_v36, %v609_v32 }
 0x2be   :  { %1546 = vmatprep.mubr.msk.bf16.mxu1 %vm691_vm8, %v619_v38 }
 0x2bf   :  { %1547 = vmatmul.mubr.msk.bf16.gmra.mrb[36].mxu1 %vm691_vm8, %v620_v37  ;;  %v1346_v37 = vld [vmem:[%s2004_s10] ss:$0 sm:$0xff] }
 0x37a   :  { %v1536_v43 = vpop.f32.mrb[24].mxu1 }
 0x37b   :  { %v762_v44 = vadd.f32 %v1536_v43, %v1329_v35  ;;  %v753_v45 = vpop.f32.mrb[25].mxu1 }
 0x37c   :  { %v754_v46 = vadd.f32 %v1329_v35, %v753_v45  ;;  %v1537_v47 = vpop.f32.mrb[26].mxu1 }
 0x37d   :  { %v765_v48 = vadd.f32 %v1537_v47, %v1329_v35  ;;  %v756_v49 = vpop.f32.mrb[27].mxu1  ;;  %v818_v51 = vmax.f32 %v762_v44, 0.0 }
 0x37e   :  { %v757_v50 = vadd.f32 %v1329_v35, %v756_v49  ;;  %v816_v53 = vmax.f32 %v754_v46, 0.0 }
 0x37f   :  { %v819_v52 = vmax.f32 %v765_v48, 0.0 }
 0x380   :  { %v817_v54 = vmax.f32 %v757_v50, 0.0 }
 0x381   :  { %v833_v10 = vpack.c.bf16 %v819_v52, %v818_v51 }
 0x382   :  { %v832_v55 = vpack.c.bf16 %v817_v54, %v816_v53  ;;  %v1540_v56 = vpop.f32.mrb[28].mxu1 }
 0x383   :  { %v778_v57 = vadd.f32 %v1540_v56, %v1329_v35  ;;  %v769_v58 = vpop.f32.mrb[29].mxu1 }
 0x384   :  { %v770_v59 = vadd.f32 %v1329_v35, %v769_v58  ;;  %v1541_v60 = vpop.f32.mrb[30].mxu1  ;;  %1558 = vmatprep.mubr.msk.bf16.mxu0 %vm468_vm7, %v832_v55 }
 0x385   :  { %v781_v61 = vadd.f32 %v1541_v60, %v1329_v35  ;;  %v772_v62 = vpop.f32.mrb[31].mxu1  ;;  %1559 = vmatmul.mubr.msk.bf16.vlgmr.msra.gmra.mrb[24].mxu0 %vm468_vm7, %v833_v10  ;;  %v822_v0 = vmax.f32 %v778_v57, 0.0 }
 0x386   :  { %v773_v63 = vadd.f32 %v1329_v35, %v772_v62  ;;  %v820_v2 = vmax.f32 %v770_v59, 0.0 }
 0x387   :  { %v823_v1 = vmax.f32 %v781_v61, 0.0 }
 0x388   :  { %v821_v3 = vmax.f32 %v773_v63, 0.0 }
 0x389   :  { %v835_v4 = vpack.c.bf16 %v823_v1, %v822_v0 }
 0x38a   :  { %v834_v6 = vpack.c.bf16 %v821_v3, %v820_v2  ;;  %v1544_v7 = vpop.f32.mrb[32].mxu1 }
 0x38b   :  { %v794_v8 = vadd.f32 %v1544_v7, %v1329_v35  ;;  %v785_v9 = vpop.f32.mrb[33].mxu1 }
 0x38c   :  { %v786_v11 = vadd.f32 %v1329_v35, %v785_v9  ;;  %v1545_v12 = vpop.f32.mrb[34].mxu1  ;;  %1562 = vmatprep.mubr.msk.bf16.mxu0 %vm468_vm7, %v834_v6 }
 0x38d   :  { %v826_v13 = vmax.f32 %v794_v8, 0.0  ;;  %v797_v14 = vadd.f32 %v1545_v12, %v1329_v35  ;;  %v788_v15 = vpop.f32.mrb[35].mxu1  ;;  %1563 = vmatmul.mubr.msk.bf16.gmra.mrb[28].mxu0 %vm468_vm7, %v835_v4 }
 0x38e   :  { %v824_v16 = vmax.f32 %v786_v11, 0.0  ;;  %v789_v17 = vadd.f32 %v1329_v35, %v788_v15 }
 0x38f   :  { %v827_v18 = vmax.f32 %v797_v14, 0.0 }
 0x390   :  { %v825_v19 = vmax.f32 %v789_v17, 0.0 }
 0x391   :  { %v837_v20 = vpack.c.bf16 %v827_v18, %v826_v13 }
 0x392   :  { %v836_v21 = vpack.c.bf16 %v825_v19, %v824_v16  ;;  %v1548_v22 = vpop.f32.mrb[36].mxu1 }
 0x393   :  { %v810_v23 = vadd.f32 %v1548_v22, %v1329_v35  ;;  %v801_v24 = vpop.f32.mrb[37].mxu1 }
 0x394   :  { %v802_v25 = vadd.f32 %v1329_v35, %v801_v24  ;;  %1566 = vmatprep.mubr.msk.bf16.mxu0 %vm468_vm7, %v836_v21  ;;  %v1549_v26 = vpop.f32.mrb[38].mxu1 }
 0x395   :  { %v830_v27 = vmax.f32 %v810_v23, 0.0  ;;  %v813_v28 = vadd.f32 %v1549_v26, %v1329_v35  ;;  %1567 = vmatmul.mubr.msk.bf16.gmra.mrb[32].mxu0 %vm468_vm7, %v837_v20  ;;  %v804_v29 = vpop.f32.mrb[39].mxu1 }
 0x396   :  { %v828_v30 = vmax.f32 %v802_v25, 0.0  ;;  %v805_v31 = vadd.f32 %v1329_v35, %v804_v29  ;;  %v1678_v29 = vmov 0.0  }
 0x397   :  { %v831_v32 = vmax.f32 %v813_v28, 0.0  ;;  %1594 = vmatprep.subr.bf16.mxu0 %v1678_v29 }
 0x398   :  { %v829_v33 = vmax.f32 %v805_v31, 0.0  ;;  %v1680_v31 = vmov 0  }
 0x399   :  { %v839_v34 = vpack.c.bf16 %v831_v32, %v830_v27  ;;  %1625 = vset.pattern.permute.xlu0 %v1680_v31  ;;  %v1359_v32 = vld [vmem:[%s2006_s12] ss:$0 sm:$0xff] }
 0x39a   :  { %v838_v36 = vpack.c.bf16 %v829_v33, %v828_v30  ;;  %v1194_v30 = vld [vmem:[#allocation2] sm:$0x1] }
 0x39b   :  { %1197 = vperm.xlu0 %1625, %v1194_v30  }
 0x39c   :  { %1570 = vmatprep.mubr.msk.bf16.mxu0 %vm468_vm7, %v838_v36 }
 0x39d   :  { %1571 = vmatmul.mubr.msk.bf16.gmra.mrb[36].mxu0 %vm468_vm7, %v839_v34 }
 0x39e   :  { %1610 = vmatprep.mubr.msk.bf16.mxu0 %vm1679_vm9, %v1678_v29 }
 0x458   :  { %v1560_v38 = vpop.f32.mrb[24].mxu0 }
 0x459   :  { %v948_v5 = vadd.f32 %v1560_v38, %v1346_v37  ;;  %v939_v39 = vpop.f32.mrb[25].mxu0 }
 0x45a   :  { %v940_v40 = vadd.f32 %v1346_v37, %v939_v39  ;;  %v1561_v41 = vpop.f32.mrb[26].mxu0 }
 0x45b   :  { %v951_v42 = vadd.f32 %v1561_v41, %v1346_v37  ;;  %v942_v43 = vpop.f32.mrb[27].mxu0  ;;  %v1004_v44 = vmax.f32 %v948_v5, 0.0 }
 0x45c   :  { %v943_v35 = vadd.f32 %v1346_v37, %v942_v43  ;;  %v1002_v46 = vmax.f32 %v940_v40, 0.0 }
 0x45d   :  { %v1005_v45 = vmax.f32 %v951_v42, 0.0 }
 0x45e   :  { %v1003_v47 = vmax.f32 %v943_v35, 0.0 }
 0x45f   :  { %v1019_v48 = vpack.c.bf16 %v1005_v45, %v1004_v44 }
 0x460   :  { %v1018_v49 = vpack.c.bf16 %v1003_v47, %v1002_v46  ;;  %v1564_v50 = vpop.f32.mrb[28].mxu0 }
 0x461   :  { %v964_v51 = vadd.f32 %v1564_v50, %v1346_v37  ;;  %v955_v52 = vpop.f32.mrb[29].mxu0 }
 0x462   :  { %v956_v53 = vadd.f32 %v1346_v37, %v955_v52  ;;  %v1565_v54 = vpop.f32.mrb[30].mxu0  ;;  %1578 = vmatprep.mubr.msk.bf16.mxu1 %vm97_vm2, %v1018_v49 }
 0x463   :  { %v967_v10 = vadd.f32 %v1565_v54, %v1346_v37  ;;  %v958_v55 = vpop.f32.mrb[31].mxu0  ;;  %1579 = vmatmul.mubr.msk.bf16.vlgmr.msra.gmra.mrb[40].mxu1 %vm97_vm2, %v1019_v48  ;;  %v1008_v57 = vmax.f32 %v964_v51, 0.0 }
 0x464   :  { %v959_v56 = vadd.f32 %v1346_v37, %v958_v55  ;;  %v1006_v59 = vmax.f32 %v956_v53, 0.0 }
 0x465   :  { %v1009_v58 = vmax.f32 %v967_v10, 0.0 }
 0x466   :  { %v1007_v60 = vmax.f32 %v959_v56, 0.0 }
 0x467   :  { %v1021_v61 = vpack.c.bf16 %v1009_v58, %v1008_v57 }
 0x468   :  { %v1020_v62 = vpack.c.bf16 %v1007_v60, %v1006_v59  ;;  %v1568_v63 = vpop.f32.mrb[32].mxu0 }
 0x469   :  { %v980_v0 = vadd.f32 %v1568_v63, %v1346_v37  ;;  %v971_v1 = vpop.f32.mrb[33].mxu0 }
 0x46a   :  { %v972_v2 = vadd.f32 %v1346_v37, %v971_v1  ;;  %v1569_v3 = vpop.f32.mrb[34].mxu0  ;;  %1582 = vmatprep.mubr.msk.bf16.mxu1 %vm97_vm2, %v1020_v62 }
 0x46b   :  { %v983_v4 = vadd.f32 %v1569_v3, %v1346_v37  ;;  %v974_v6 = vpop.f32.mrb[35].mxu0  ;;  %1583 = vmatmul.mubr.msk.bf16.gmra.mrb[44].mxu1 %vm97_vm2, %v1021_v61  ;;  %v1012_v8 = vmax.f32 %v980_v0, 0.0 }
 0x46c   :  { %v975_v7 = vadd.f32 %v1346_v37, %v974_v6  ;;  %v1010_v11 = vmax.f32 %v972_v2, 0.0 }
 0x46d   :  { %v1013_v9 = vmax.f32 %v983_v4, 0.0 }
 0x46e   :  { %v1011_v12 = vmax.f32 %v975_v7, 0.0 }
 0x46f   :  { %v1023_v13 = vpack.c.bf16 %v1013_v9, %v1012_v8 }
 0x470   :  { %v1022_v14 = vpack.c.bf16 %v1011_v12, %v1010_v11  ;;  %v1572_v15 = vpop.f32.mrb[36].mxu0 }
 0x471   :  { %v996_v16 = vadd.f32 %v1572_v15, %v1346_v37  ;;  %v987_v17 = vpop.f32.mrb[37].mxu0 }
 0x472   :  { %v988_v18 = vadd.f32 %v1346_v37, %v987_v17  ;;  %1586 = vmatprep.mubr.msk.bf16.mxu1 %vm97_vm2, %v1022_v14  ;;  %v1573_v19 = vpop.f32.mrb[38].mxu0 }
 0x473   :  { %v1016_v20 = vmax.f32 %v996_v16, 0.0  ;;  %v999_v21 = vadd.f32 %v1573_v19, %v1346_v37  ;;  %1587 = vmatmul.mubr.msk.bf16.gmra.mrb[48].mxu1 %vm97_vm2, %v1023_v13  ;;  %v990_v22 = vpop.f32.mrb[39].mxu0 }
 0x474   :  { %v1014_v23 = vmax.f32 %v988_v18, 0.0  ;;  %v991_v24 = vadd.f32 %v1346_v37, %v990_v22 }
 0x475   :  { %v1017_v25 = vmax.f32 %v999_v21, 0.0 }
 0x476   :  { %v1015_v26 = vmax.f32 %v991_v24, 0.0 }
 0x477   :  { %v1025_v27 = vpack.c.bf16 %v1017_v25, %v1016_v20 }
 0x478   :  { %v1024_v28 = vpack.c.bf16 %v1015_v26, %v1014_v23 }
 0x47a   :  { %1590 = vmatprep.mubr.msk.bf16.mxu1 %vm97_vm2, %v1024_v28 }
 0x47b   :  { %1591 = vmatmul.mubr.msk.bf16.gmra.mrb[52].mxu1 %vm97_vm2, %v1025_v27 }
 0x536   :  { %v1580_v33 = vpop.f32.mrb[40].mxu1 }
 0x537   :  { %v1115_v34 = vadd.f32 %v1580_v33, %v1359_v32  ;;  %v1106_v36 = vpop.f32.mrb[41].mxu1 }
 0x538   :  { %v1107_v37 = vadd.f32 %v1359_v32, %v1106_v36  ;;  %v1581_v38 = vpop.f32.mrb[42].mxu1  ;;  %v1200_v36 = vlaneseq }
 0x539   :  { %v1118_v5 = vadd.f32 %v1581_v38, %v1359_v32  ;;  %v1109_v39 = vpop.f32.mrb[43].mxu1  ;;  %v1171_v41 = vmax.f32 %v1115_v34, 0.0  ;;  %v1185_v34 = vld [vmem:[%s2007_s13] sm:$0x1]  ;;  %s1653_s13 = scalar_lea.vmem %s1286_s14, 16 }
 0x53a   :  { %v1110_v40 = vadd.f32 %v1359_v32, %v1109_v39  ;;  %v1169_v43 = vmax.f32 %v1107_v37, 0.0  ;;  %v1201_v37 = vshrl.u32 %v1200_v36, 7  ;;  %p1654_p0 = scmp.ne.s32.totalorder %s1286_s14, %s1653_s13  ;;  %p1659_p2 = scmp.lt.s32.totalorder %s1657_s28, %s1653_s13 }
 0x53b   :  { %v1172_v42 = vmax.f32 %v1118_v5, 0.0  ;;  %v1198_v5 = vpop.permute.xlu0 %1197 }
 0x53c   :  { %v1170_v35 = vmax.f32 %v1110_v40, 0.0  ;;  %v1202_v38 = vsub.s32 0, %v1201_v37  ;;  %p1660_p3 = por %p1659_p2, %p1658_p1 }
 0x53d   :  { %v1187_v44 = vpack.c.bf16 %v1172_v42, %v1171_v41 }
 0x53e   :  { %v1186_v45 = vpack.c.bf16 %v1170_v35, %v1169_v43  ;;  %v1584_v46 = vpop.f32.mrb[44].mxu1  ;;  %v1203_v39 = vrot.slane %v1198_v5, %v1202_v38  ;;  %p1661_p4 = pnand %p1660_p3, %p1654_p0 }
 0x53f   :  { %v1131_v47 = vadd.f32 %v1584_v46, %v1359_v32  ;;  %v1122_v48 = vpop.f32.mrb[45].mxu1  ;;  %v1212_v1 = vsel %vm1204_vm10, %v1187_v44, 0 }
 0x540   :  { %v1123_v49 = vadd.f32 %v1359_v32, %v1122_v48  ;;  %v1585_v50 = vpop.f32.mrb[46].mxu1  ;;  %v1209_v51 = vsel %vm1204_vm10, %v1186_v45, 0 }
 0x541   :  { %v1134_v52 = vadd.f32 %v1585_v50, %v1359_v32  ;;  %v1125_v53 = vpop.f32.mrb[47].mxu1  ;;  %1595 = vmatpush3.bf16.xpose.msra.mxu0 %v1209_v51  ;;  %v1175_v10 = vmax.f32 %v1131_v47, 0.0 }
 0x542   :  { %v1126_v54 = vadd.f32 %v1359_v32, %v1125_v53  ;;  %1596 = vmatprep.subr.bf16.mxu0 %v1678_v29  ;;  %v1173_v56 = vmax.f32 %v1123_v49, 0.0 }
 0x543   :  { %v1176_v55 = vmax.f32 %v1134_v52, 0.0 }
 0x544   :  { %v1174_v57 = vmax.f32 %v1126_v54, 0.0 }
 0x545   :  { %v1189_v58 = vpack.c.bf16 %v1176_v55, %v1175_v10 }
 0x546   :  { %v1188_v59 = vpack.c.bf16 %v1174_v57, %v1173_v56  ;;  %v1588_v60 = vpop.f32.mrb[48].mxu1 }
 0x547   :  { %v1147_v61 = vadd.f32 %v1588_v60, %v1359_v32  ;;  %v1138_v62 = vpop.f32.mrb[49].mxu1  ;;  %v1218_v28 = vsel %vm1204_vm10, %v1189_v58, 0 }
 0x548   :  { %v1139_v63 = vadd.f32 %v1359_v32, %v1138_v62  ;;  %v1589_v0 = vpop.f32.mrb[50].mxu1  ;;  %v1215_v18 = vsel %vm1204_vm10, %v1188_v59, 0 }
 0x549   :  { %v1150_v2 = vadd.f32 %v1589_v0, %v1359_v32  ;;  %v1141_v3 = vpop.f32.mrb[51].mxu1  ;;  %1597 = vmatpush3.bf16.xpose.msra.mxu0 %v1212_v1  ;;  %v1179_v6 = vmax.f32 %v1147_v61, 0.0 }
 0x54a   :  { %v1142_v4 = vadd.f32 %v1359_v32, %v1141_v3  ;;  %1598 = vmatprep.subr.bf16.mxu0 %v1678_v29  ;;  %v1177_v8 = vmax.f32 %v1139_v63, 0.0 }
 0x54b   :  { %v1180_v7 = vmax.f32 %v1150_v2, 0.0 }
 0x54c   :  { %v1178_v9 = vmax.f32 %v1142_v4, 0.0 }
 0x54d   :  { %v1191_v11 = vpack.c.bf16 %v1180_v7, %v1179_v6 }
 0x54e   :  { %v1190_v12 = vpack.c.bf16 %v1178_v9, %v1177_v8  ;;  %v1592_v13 = vpop.f32.mrb[52].mxu1 }
 0x54f   :  { %v1163_v14 = vadd.f32 %v1592_v13, %v1359_v32  ;;  %v1154_v15 = vpop.f32.mrb[53].mxu1  ;;  %v1224_v31 = vsel %vm1204_vm10, %v1191_v11, 0 }
 0x550   :  { %v1155_v16 = vadd.f32 %v1359_v32, %v1154_v15  ;;  %v1593_v17 = vpop.f32.mrb[54].mxu1  ;;  %v1221_v30 = vsel %vm1204_vm10, %v1190_v12, 0 }
 0x551   :  { %v1183_v19 = vmax.f32 %v1163_v14, 0.0  ;;  %v1166_v20 = vadd.f32 %v1593_v17, %v1359_v32  ;;  %1599 = vmatpush3.bf16.xpose.msra.mxu0 %v1215_v18  ;;  %v1157_v21 = vpop.f32.mrb[55].mxu1 }
 0x552   :  { %v1181_v22 = vmax.f32 %v1155_v16, 0.0  ;;  %v1158_v23 = vadd.f32 %v1359_v32, %v1157_v21  ;;  %1600 = vmatprep.subr.bf16.mxu0 %v1678_v29 }
 0x553   :  { %v1184_v24 = vmax.f32 %v1166_v20, 0.0 }
 0x554   :  { %v1182_v25 = vmax.f32 %v1158_v23, 0.0 }
 0x555   :  { %v1193_v26 = vpack.c.bf16 %v1184_v24, %v1183_v19 }
 0x556   :  { %v1192_v27 = vpack.c.bf16 %v1182_v25, %v1181_v22 }
 0x557   :  { %v1230_v33 = vsel %vm1204_vm10, %v1193_v26, 0 }
 0x558   :  { %v1227_v32 = vsel %vm1204_vm10, %v1192_v27, 0 }
 0x559   :  { %1601 = vmatpush3.bf16.xpose.msra.mxu0 %v1218_v28 }
 0x55a   :  { %1602 = vmatprep.subr.bf16.mxu0 %v1678_v29 }
 0x561   :  { %1603 = vmatpush3.bf16.xpose.msra.mxu0 %v1221_v30 }
 0x562   :  { %1604 = vmatprep.subr.bf16.mxu0 %v1678_v29 }
 0x569   :  { %1605 = vmatpush3.bf16.xpose.msra.mxu0 %v1224_v31 }
 0x56a   :  { %1606 = vmatprep.subr.bf16.mxu0 %v1678_v29 }
 0x571   :  { %1607 = vmatpush3.bf16.xpose.msra.mxu0 %v1227_v32 }
 0x572   :  { %1608 = vmatprep.subr.bf16.mxu0 %v1678_v29 }
 0x579   :  { %1609 = vmatpush3.bf16.xpose.msra.mxu0 %v1230_v33 }
 0x580   :  { %1611 = vmatmul.mubr.msk.bf16.vlgmr.msra.gmra.mrb[40].mxu0 %vm1204_vm10, %v1185_v34 }
 0x653   :  { %v1266_v40 = vpop.f32.mrb[40].mxu0 }
 0x654   :  { %v1267_v41 = vadd.f32 %v1266_v40, %v1203_v39  ;;  %v1612_v42 = vpop.f32.mrb[41].mxu0 }
 0x655   :  { %v1269_v43 = vpop.f32.mrb[42].mxu0 }
 0x656   :  { %v1371_v35 = vmul.f32 -1.442695, %v1267_v41  ;;  %v1613_v29 = vpop.f32.mrb[43].mxu0 }
 0x658   :  { %1649 = vpow2.f32 %v1371_v35 }
 0x662   :  { %v1650_v44 = vpop.eup %1649 }
 0x663   :  { %v1275_v45 = vadd.f32 1.0, %v1650_v44 }
 0x665   :  { %1651 = vrcp.f32 %v1275_v45 }
 0x66f   :  { %v1652_v46 = vpop.eup %1651 }
 0x670   :  { %1278 = vst [vmem:[#allocation3] sm:$0x1] %v1652_v46 }
 0x671   :  { %1664 = shalt.err (!%p1661_p4)
}
 0x672   :  { %s1665_s29 = scalar_lea.hbm %s2009_s15, 16 }
 0x673   :  { %p1666_p5 = scmp.ne.s32.totalorder %s2009_s15, %s1665_s29  ;;  %p1669_p6 = scmp.lt.u32.totalorder %s1665_s29, %s2009_s15 }
 0x675   :  { %p1671_p7 = pnand %p1669_p6, %p1666_p5 }
 0x677   :  { %1674 = shalt.err (!%p1671_p7)
}
 0x678   :  { %1288 = dma.vmem_to_hbm [thread:$0]  %s1286_s14, 16, %s2009_s15, [#allocation4]  }
 0x679   :  { %1675 = dma.done.wait [#allocation4], 16  }
 0x67a   :  { %1676 = vsyncadd [#allocation4], 4294967280 }
 0x67b   :  { %1292 = vsyncpa [#allocation4], 1 }

</bundles_post_ra>
